<compile_context>
chip_gen: v6e
topology: v6e:2x2x1
jax: 0.10.0
libtpu: 0.0.40
codegen_flags: <defaults>
</compile_context>

<pallas_src>
import jax
import jax.numpy as jnp
from jax.experimental import pallas as pl
from jax.experimental.pallas import tpu as pltpu


def _round_up(x, m):
    return ((x + m - 1) // m) * m


def _pick_tile(total, cap):
    """Largest 128-multiple tile <= cap that divides `total` (total is a multiple of 128)."""
    best = 128
    for cand in (256, 384, 512, 768, 1024, 1536, 2048):
        if cand <= cap and cand <= total and total % cand == 0:
            best = cand
    return best


# ----------------------------------------------------------------------------
# Fused kernel: GIN aggregation (tiled over the adjacency contraction), 2-layer
# MLP, and per-tile semantic-attention partial logit sum.
# Grid = (node_tiles, R, k_tiles); k innermost, "arbitrary", f32 accumulator.
# ----------------------------------------------------------------------------
def _make_gin_kernel(n_real, tile_m, tile_k):
    def kernel(adj_ref, featr_ref, feati_ref, w1_ref, b1_ref, w2_ref, b2_ref,
               wa_ref, ba_ref, qa_ref, h_ref, e_ref, acc_ref):
        # All program_id / num_programs reads stay at the top level of the body (the
        # interpret-mode fallback cannot lower program_id inside pl.when sub-jaxprs).
        i = pl.program_id(0)
        k = pl.program_id(2)
        last_k = pl.num_programs(2) - 1
        row_base = i * tile_m

        @pl.when(k == 0)
        def _():
            # GIN self term (1+eps)*x with eps=0 seeds the accumulator (exact f32 view).
            acc_ref[...] = feati_ref[...]

        # GIN 'sum' aggregation: bf16 x bf16 MXU matmul, f32 accumulation.
        a = adj_ref[0]
        if a.dtype != jnp.bfloat16:          # static at trace time; only if f32 adj was passed
            a = a.astype(jnp.bfloat16)
        featk = featr_ref[pl.ds(k * tile_k, tile_k), :]          # bf16 slice of resident feat
        acc_ref[...] += jnp.dot(a, featk, preferred_element_type=jnp.float32)

        @pl.when(k == last_k)
        def _():
            pre = acc_ref[...]                                   # feat + agg
            h1 = jnp.maximum(
                jnp.dot(pre, w1_ref[...], preferred_element_type=jnp.float32) + b1_ref[...],
                0.0)
            h2 = jnp.maximum(
                jnp.dot(h1, w2_ref[...], preferred_element_type=jnp.float32) + b2_ref[...],
                0.0)
            h_ref[0] = h2.astype(h_ref.dtype)

            # Per-node attention logit: tanh(h Wa + ba) . qa — VPU multiply by the broadcast
            # qa row + lane reduction (no 127/128-wasted MXU matmul in the epilogue).
            t = jnp.tanh(
                jnp.dot(h2, wa_ref[...], preferred_element_type=jnp.float32) + ba_ref[...])
            logit = jnp.sum(t * qa_ref[...], axis=-1, keepdims=True)        # (TM, 1)
            # Mask padded node rows out of the mean (row_base captured, no program_id here).
            row = jax.lax.broadcasted_iota(jnp.int32, logit.shape, 0) + row_base
            logit = jnp.where(row < n_real, logit, 0.0)
            e_ref[0, 0] = jnp.full((8, 128), jnp.sum(logit), dtype=jnp.float32)

    return kernel


def mux_gnn_layer(adj, feat, params):
    """adj: (R, N, N) {bf16|f32}, feat: (N, Din) f32
       -> out (N, Dout) f32, h (R, N, Dout) bf16, beta (R,) f32."""
    R, N, _ = adj.shape
    Din = feat.shape[1]
    Dout = params["w2"].shape[1]
    dim_a = params["wa"].shape[1]

    # ---- pad to TPU-friendly shapes (zero padding is exact for this layer) ----
    Np = _round_up(N, 128)
    DinP = _round_up(Din, 128)
    DoutP = _round_up(Dout, 128)
    DaP = _round_up(dim_a, 128)

    TM = _pick_tile(Np, 512)       # node tile (output rows)
    TK = _pick_tile(Np, 2048)      # adjacency contraction tile
    num_i, num_k = Np // TM, Np // TK

    # No dtype prepass over the adjacency: keep the caller's dtype (bf16 fast path; f32 is
    # cast per tile in-kernel).  Pad only where needed.
    adj_p = adj if Np == N else jnp.pad(adj, ((0, 0), (0, Np - N), (0, Np - N)))
    feat_f32 = jnp.pad(feat.astype(jnp.float32), ((0, Np - N), (0, DinP - Din)))
    feat_bf16 = feat_f32.astype(jnp.bfloat16)                     # MXU operand (resident)
    w1 = jnp.pad(params["w1"], ((0, DinP - Din), (0, DoutP - Dout)))
    b1 = jnp.pad(params["b1"], ((0, 0), (0, DoutP - Dout)))
    w2 = jnp.pad(params["w2"], ((0, DoutP - Dout), (0, DoutP - Dout)))
    b2 = jnp.pad(params["b2"], ((0, 0), (0, DoutP - Dout)))
    wa = jnp.pad(params["wa"], ((0, DoutP - Dout), (0, DaP - dim_a)))
    ba = jnp.pad(params["ba"], ((0, 0), (0, DaP - dim_a)))
    qa = jnp.pad(params["qa"].T, ((0, 0), (0, DaP - dim_a)))      # (1, DaP) row vector

    const = lambda i, r, k: (0, 0)
    adj_bytes = jnp.dtype(adj_p.dtype).itemsize
    h_bytes = 2  # bf16 output
    w_elems = DinP * DoutP + DoutP * DoutP + DoutP * DaP + 3 * DoutP + 2 * DaP

    cost = pl.CostEstimate(
        flops=(2 * R * Np * Np * DinP
               + 2 * R * Np * (DinP * DoutP + DoutP * DoutP + DoutP * DaP)
               + 2 * R * Np * DaP),
        transcendentals=R * Np * DaP,
        bytes_accessed=(R * Np * Np * adj_bytes              # adjacency, streamed once
                        + Np * DinP * (2 + 4)                # feat: bf16 resident + f32 view
                        + R * Np * DoutP * h_bytes           # h writeback
                        + R * num_i * 8 * 128 * 4            # attention partial sums
                        + w_elems * 4),
    )

    # Double-buffered VMEM footprint + headroom (well under v7x's 64 MiB for these tiles).
    vmem_bytes = (2 * TM * TK * adj_bytes          # adjacency tile
                  + 2 * Np * DinP * 2              # resident bf16 feat
                  + 2 * TM * DinP * 4              # f32 self-term tile
                  + TM * DinP * 4                  # f32 aggregation accumulator
                  + 2 * TM * DoutP * h_bytes       # h output tile
                  + 2 * 8 * 128 * 4                # e output tile
                  + 2 * w_elems * 4)               # weights / biases
    vmem_limit = int(min(max(vmem_bytes + 8 * 1024 * 1024, 24 * 1024 * 1024),
                         112 * 1024 * 1024))

    h, e = pl.pallas_call(
        _make_gin_kernel(N, TM, TK),
        out_shape=(
            jax.ShapeDtypeStruct((R, Np, DoutP), jnp.bfloat16),
            jax.ShapeDtypeStruct((R, num_i, 8, 128), jnp.float32),
        ),
        grid_spec=pltpu.PrefetchScalarGridSpec(
            num_scalar_prefetch=0,
            grid=(num_i, R, num_k),
            in_specs=[
                pl.BlockSpec((1, TM, TK), lambda i, r, k: (r, i, k)),   # adjacency tile
                pl.BlockSpec((Np, DinP), const),                        # feat, VMEM-resident bf16
                pl.BlockSpec((TM, DinP), lambda i, r, k: (i, 0)),       # feat self-term, f32
                pl.BlockSpec((DinP, DoutP), const),                     # W1
                pl.BlockSpec((1, DoutP), const),                        # b1
                pl.BlockSpec((DoutP, DoutP), const),                    # W2
                pl.BlockSpec((1, DoutP), const),                        # b2
                pl.BlockSpec((DoutP, DaP), const),                      # Wa
                pl.BlockSpec((1, DaP), const),                          # ba
                pl.BlockSpec((1, DaP), const),                          # qa row
            ],
            out_specs=[
                pl.BlockSpec((1, TM, DoutP), lambda i, r, k: (r, i, 0)),
                pl.BlockSpec((1, 1, 8, 128), lambda i, r, k: (r, i, 0, 0)),
            ],
            scratch_shapes=[pltpu.VMEM((TM, DinP), jnp.float32)],       # GIN agg accumulator
        ),
        compiler_params=pltpu.CompilerParams(
            dimension_semantics=("parallel", "parallel", "arbitrary"),
            vmem_limit_bytes=vmem_limit,
        ),
        cost_estimate=cost,
    )(adj_p, feat_bf16, feat_f32, w1, b1, w2, b2, wa, ba, qa)

    # Semantic attention over relations: R scalars -> softmax.  The beta-weighted combine is a
    # tiny mem-bound reduction, left to XLA (fused multiply+reduce) instead of a second kernel.
    scores = jnp.sum(e[:, :, 0, 0], axis=1) / N            # mean over the real N nodes
    beta = jax.nn.softmax(scores, axis=0).astype(jnp.float32)

    h_real = h[:, :N, :Dout]
    out = jnp.einsum('r,rnd->nd', beta, h_real.astype(jnp.float32))
    return out, h_real, beta


def reference(adj, feat, params):
    """Pure-JAX f32 reference for correctness check."""
    agg = jnp.einsum('rnm,md->rnd', adj, feat)
    pre = feat[None] + agg
    h1 = jax.nn.relu(jnp.einsum('rnd,de->rne', pre, params["w1"]) + params["b1"])
    h = jax.nn.relu(jnp.einsum('rnd,de->rne', h1, params["w2"]) + params["b2"])
    att = jnp.einsum('rna,ao->rno',
                     jnp.tanh(jnp.einsum('rnd,da->rna', h, params["wa"]) + params["ba"]),
                     params["qa"])
    beta = jax.nn.softmax(jnp.mean(att[:, :, 0], axis=1), axis=0)
    out = jnp.einsum('r,rnd->nd', beta, h)
    return out


if __name__ == "__main__":
    # Small shapes consistent with the module: 3 relations, 16 nodes, in=out=32, dim_a=8
    R, N, Din, Dout, dim_a = 3, 16, 32, 32, 8

    key = jax.random.PRNGKey(0)
    ks = jax.random.split(key, 10)

    feat = jax.random.normal(ks[0], (N, Din), dtype=jnp.float32)
    # deterministic sparse-ish 0/1 adjacency per relation, stored directly in bf16 (exact)
    adj = (jax.random.uniform(ks[1], (R, N, N)) < 0.2).astype(jnp.bfloat16)

    params = {
        "w1": jax.random.normal(ks[2], (Din, Dout), dtype=jnp.float32) * 0.1,
        "b1": jax.random.normal(ks[3], (1, Dout), dtype=jnp.float32) * 0.1,
        "w2": jax.random.normal(ks[4], (Dout, Dout), dtype=jnp.float32) * 0.1,
        "b2": jax.random.normal(ks[5], (1, Dout), dtype=jnp.float32) * 0.1,
        "wa": jax.random.normal(ks[6], (Dout, dim_a), dtype=jnp.float32) * 0.1,
        "ba": jax.random.normal(ks[7], (1, dim_a), dtype=jnp.float32) * 0.1,
        "qa": jax.random.normal(ks[8], (dim_a, 1), dtype=jnp.float32) * 0.1,
    }

    out, h, beta = mux_gnn_layer(adj, feat, params)
    out = jax.block_until_ready(out)

    ref = reference(adj.astype(jnp.float32), feat, params)
    assert out.shape == (N, Dout)
    assert h.shape == (R, N, Dout)
    assert beta.shape == (R,)
    # bf16 MXU operands / bf16 h output -> ~1e-3 relative deviation vs the f32 reference.
    assert jnp.allclose(out, ref, atol=1e-2, rtol=1e-2), "mismatch vs reference"

    print("KERNEL_OK")
</pallas_src>

<mosaic_0001>
module attributes {stable_mosaic.version = 11 : i64} {
  func.func @kernel(%arg0: i32, %arg1: i32, %arg2: i32, %arg3: memref<1x128x128xbf16, #tpu.memory_space<vmem>>, %arg4: memref<128x128xbf16, #tpu.memory_space<vmem>>, %arg5: memref<128x128xf32, #tpu.memory_space<vmem>>, %arg6: memref<128x128xf32, #tpu.memory_space<vmem>>, %arg7: memref<1x128xf32, #tpu.memory_space<vmem>>, %arg8: memref<128x128xf32, #tpu.memory_space<vmem>>, %arg9: memref<1x128xf32, #tpu.memory_space<vmem>>, %arg10: memref<128x128xf32, #tpu.memory_space<vmem>>, %arg11: memref<1x128xf32, #tpu.memory_space<vmem>>, %arg12: memref<1x128xf32, #tpu.memory_space<vmem>>, %arg13: memref<1x128x128xbf16, #tpu.memory_space<vmem>>, %arg14: memref<1x1x8x128xf32, #tpu.memory_space<vmem>>, %arg15: memref<128x128xf32, #tpu.memory_space<vmem>>) attributes {dimension_semantics = [#tpu.dimension_semantics<parallel>, #tpu.dimension_semantics<parallel>, #tpu.dimension_semantics<arbitrary>], iteration_bounds = array<i64: 1, 3, 1>, scalar_prefetch = 0 : i64, scratch_operands = 1 : i64, tpu.core_type = #tpu.core_type<tc>, window_params = [{transform_indices = @transform_0, window_bounds = array<i64: 1, 128, 128>}, {pipeline_mode = #tpu.pipeline_mode<synchronous>, transform_indices = @transform_1, window_bounds = array<i64: 128, 128>}, {transform_indices = @transform_2, window_bounds = array<i64: 128, 128>}, {pipeline_mode = #tpu.pipeline_mode<synchronous>, transform_indices = @transform_3, window_bounds = array<i64: 128, 128>}, {pipeline_mode = #tpu.pipeline_mode<synchronous>, transform_indices = @transform_4, window_bounds = array<i64: 1, 128>}, {pipeline_mode = #tpu.pipeline_mode<synchronous>, transform_indices = @transform_5, window_bounds = array<i64: 128, 128>}, {pipeline_mode = #tpu.pipeline_mode<synchronous>, transform_indices = @transform_6, window_bounds = array<i64: 1, 128>}, {pipeline_mode = #tpu.pipeline_mode<synchronous>, transform_indices = @transform_7, window_bounds = array<i64: 128, 128>}, {pipeline_mode = #tpu.pipeline_mode<synchronous>, transform_indices = @transform_8, window_bounds = array<i64: 1, 128>}, {pipeline_mode = #tpu.pipeline_mode<synchronous>, transform_indices = @transform_9, window_bounds = array<i64: 1, 128>}, {transform_indices = @transform_10, window_bounds = array<i64: 1, 128, 128>}, {transform_indices = @transform_11, window_bounds = array<i64: 1, 1, 8, 128>}]} {
    %c128_i32 = arith.constant 128 : i32
    %0 = arith.muli %arg0, %c128_i32 : i32
    %c0_i32 = arith.constant 0 : i32
    %1 = arith.cmpi eq, %arg2, %c0_i32 : i32
    %2 = arith.extui %1 : i1 to i32
    %c0_i32_0 = arith.constant 0 : i32
    %3 = arith.cmpi ne, %2, %c0_i32_0 : i32
    scf.if %3 {
      %c0_11 = arith.constant 0 : index
      %c0_12 = arith.constant 0 : index
      %16 = vector.load %arg5[%c0_11, %c0_12] : memref<128x128xf32, #tpu.memory_space<vmem>>, vector<128x128xf32>
      %c0_13 = arith.constant 0 : index
      %c0_14 = arith.constant 0 : index
      %17 = vector.load %arg15[%c0_13, %c0_14] : memref<128x128xf32, #tpu.memory_space<vmem>>, vector<128x128xf32>
      tpu.vector_store %arg15[%c0_13, %c0_14], %16 {strides = array<i32>} : memref<128x128xf32, #tpu.memory_space<vmem>>, vector<128x128xf32>,
    } else {
    }
    %c0 = arith.constant 0 : index
    %c0_1 = arith.constant 0 : index
    %c0_2 = arith.constant 0 : index
    %4 = vector.load %arg3[%c0, %c0_1, %c0_2] : memref<1x128x128xbf16, #tpu.memory_space<vmem>>, vector<1x128x128xbf16>
    %5 = vector.shape_cast %4 : vector<1x128x128xbf16> to vector<128x128xbf16>
    %c128_i32_3 = arith.constant 128 : i32
    %6 = arith.muli %arg2, %c128_i32_3 : i32
    %7 = arith.index_cast %6 : i32 to index
    %c0_4 = arith.constant 0 : index
    %8 = vector.load %arg4[%7, %c0_4] : memref<128x128xbf16, #tpu.memory_space<vmem>>, vector<128x128xbf16>
    %c0_5 = arith.constant 0 : index
    %c0_6 = arith.constant 0 : index
    %9 = vector.load %arg15[%c0_5, %c0_6] : memref<128x128xf32, #tpu.memory_space<vmem>>, vector<128x128xf32>
    %cst = arith.constant dense<0.000000e+00> : vector<128x128xf32>
    %10 = tpu.matmul %5, %8, %cst {dimension_numbers = #tpu.dot_dimension_numbers<[1], [0], [0], [1], [0, 0, 1, 1], [], []>} : vector<128x128xbf16>, vector<128x128xbf16>, vector<128x128xf32> -> vector<128x128xf32>
    %11 = arith.addf %9, %10 : vector<128x128xf32>
    %c0_7 = arith.constant 0 : index
    %c0_8 = arith.constant 0 : index
    %12 = vector.load %arg15[%c0_7, %c0_8] : memref<128x128xf32, #tpu.memory_space<vmem>>, vector<128x128xf32>
    tpu.vector_store %arg15[%c0_7, %c0_8], %11 {strides = array<i32>} : memref<128x128xf32, #tpu.memory_space<vmem>>, vector<128x128xf32>,
    %c0_i32_9 = arith.constant 0 : i32
    %13 = arith.cmpi eq, %arg2, %c0_i32_9 : i32
    %14 = arith.extui %13 : i1 to i32
    %c0_i32_10 = arith.constant 0 : i32
    %15 = arith.cmpi ne, %14, %c0_i32_10 : i32
    scf.if %15 {
      %c0_11 = arith.constant 0 : index
      %c0_12 = arith.constant 0 : index
      %16 = vector.load %arg15[%c0_11, %c0_12] : memref<128x128xf32, #tpu.memory_space<vmem>>, vector<128x128xf32>
      %c0_13 = arith.constant 0 : index
      %c0_14 = arith.constant 0 : index
      %17 = vector.load %arg6[%c0_13, %c0_14] : memref<128x128xf32, #tpu.memory_space<vmem>>, vector<128x128xf32>
      %cst_15 = arith.constant dense<0.000000e+00> : vector<128x128xf32>
      %18 = tpu.matmul %16, %17, %cst_15 {dimension_numbers = #tpu.dot_dimension_numbers<[1], [0], [0], [1], [0, 0, 1, 1], [], []>} : vector<128x128xf32>, vector<128x128xf32>, vector<128x128xf32> -> vector<128x128xf32>
      %c0_16 = arith.constant 0 : index
      %c0_17 = arith.constant 0 : index
      %19 = vector.load %arg7[%c0_16, %c0_17] : memref<1x128xf32, #tpu.memory_space<vmem>>, vector<1x128xf32>
      %20 = vector.broadcast %19 : vector<1x128xf32> to vector<128x128xf32>
      %21 = arith.addf %18, %20 : vector<128x128xf32>
      %cst_18 = arith.constant 0.000000e+00 : f32
      %22 = vector.broadcast %cst_18 : f32 to vector<128x128xf32>
      %23 = arith.maximumf %21, %22 : vector<128x128xf32>
      %c0_19 = arith.constant 0 : index
      %c0_20 = arith.constant 0 : index
      %24 = vector.load %arg8[%c0_19, %c0_20] : memref<128x128xf32, #tpu.memory_space<vmem>>, vector<128x128xf32>
      %cst_21 = arith.constant dense<0.000000e+00> : vector<128x128xf32>
      %25 = tpu.matmul %23, %24, %cst_21 {dimension_numbers = #tpu.dot_dimension_numbers<[1], [0], [0], [1], [0, 0, 1, 1], [], []>} : vector<128x128xf32>, vector<128x128xf32>, vector<128x128xf32> -> vector<128x128xf32>
      %c0_22 = arith.constant 0 : index
      %c0_23 = arith.constant 0 : index
      %26 = vector.load %arg9[%c0_22, %c0_23] : memref<1x128xf32, #tpu.memory_space<vmem>>, vector<1x128xf32>
      %27 = vector.broadcast %26 : vector<1x128xf32> to vector<128x128xf32>
      %28 = arith.addf %25, %27 : vector<128x128xf32>
      %cst_24 = arith.constant 0.000000e+00 : f32
      %29 = vector.broadcast %cst_24 : f32 to vector<128x128xf32>
      %30 = arith.maximumf %28, %29 : vector<128x128xf32>
      %31 = arith.truncf %30 : vector<128x128xf32> to vector<128x128xbf16>
      %c0_25 = arith.constant 0 : index
      %c0_26 = arith.constant 0 : index
      %c0_27 = arith.constant 0 : index
      %32 = vector.load %arg13[%c0_25, %c0_26, %c0_27] : memref<1x128x128xbf16, #tpu.memory_space<vmem>>, vector<1x128x128xbf16>
      %33 = vector.shape_cast %32 : vector<1x128x128xbf16> to vector<128x128xbf16>
      %34 = vector.shape_cast %31 : vector<128x128xbf16> to vector<1x128x128xbf16>
      tpu.vector_store %arg13[%c0_25, %c0_26, %c0_27], %34 {strides = array<i32>} : memref<1x128x128xbf16, #tpu.memory_space<vmem>>, vector<1x128x128xbf16>,
      %c0_28 = arith.constant 0 : index
      %c0_29 = arith.constant 0 : index
      %35 = vector.load %arg10[%c0_28, %c0_29] : memref<128x128xf32, #tpu.memory_space<vmem>>, vector<128x128xf32>
      %cst_30 = arith.constant dense<0.000000e+00> : vector<128x128xf32>
      %36 = tpu.matmul %30, %35, %cst_30 {dimension_numbers = #tpu.dot_dimension_numbers<[1], [0], [0], [1], [0, 0, 1, 1], [], []>} : vector<128x128xf32>, vector<128x128xf32>, vector<128x128xf32> -> vector<128x128xf32>
      %c0_31 = arith.constant 0 : index
      %c0_32 = arith.constant 0 : index
      %37 = vector.load %arg11[%c0_31, %c0_32] : memref<1x128xf32, #tpu.memory_space<vmem>>, vector<1x128xf32>
      %38 = vector.broadcast %37 : vector<1x128xf32> to vector<128x128xf32>
      %39 = arith.addf %36, %38 : vector<128x128xf32>
      %40 = math.tanh %39 : vector<128x128xf32>
      %c0_33 = arith.constant 0 : index
      %c0_34 = arith.constant 0 : index
      %41 = vector.load %arg12[%c0_33, %c0_34] : memref<1x128xf32, #tpu.memory_space<vmem>>, vector<1x128xf32>
      %42 = vector.broadcast %41 : vector<1x128xf32> to vector<128x128xf32>
      %43 = arith.mulf %40, %42 : vector<128x128xf32>
      %cst_35 = arith.constant dense<0.000000e+00> : vector<128xf32>
      %44 = vector.multi_reduction <add>, %43, %cst_35 [1] : vector<128x128xf32> to vector<128xf32>
      %45 = vector.shape_cast %44 : vector<128xf32> to vector<128x1xf32>
      %46 = tpu.iota {dimensions = array<i32: 0>} : vector<128x1xi32>
      %47 = vector.broadcast %0 : i32 to vector<128x1xi32>
      %48 = arith.addi %46, %47 : vector<128x1xi32>
      %c16_i32 = arith.constant 16 : i32
      %49 = vector.broadcast %c16_i32 : i32 to vector<128x1xi32>
      %50 = arith.cmpi slt, %48, %49 : vector<128x1xi32>
      %cst_36 = arith.constant 0.000000e+00 : f32
      %51 = vector.broadcast %cst_36 : f32 to vector<128x1xf32>
      %52 = arith.select %50, %45, %51 : vector<128x1xi1>, vector<128x1xf32>
      %53 = vector.shape_cast %52 : vector<128x1xf32> to vector<1x128x1xf32>
      %cst_37 = arith.constant dense<0.000000e+00> : vector<1xf32>
      %54 = vector.multi_reduction <add>, %53, %cst_37 [1, 2] : vector<1x128x1xf32> to vector<1xf32>
      %55 = vector.shape_cast %54 : vector<1xf32> to vector<1x1x1xf32>
      %56 = vector.extract %55[0, 0, 0] : f32 from vector<1x1x1xf32>
      %57 = vector.broadcast %56 : f32 to vector<8x128xf32>
      %c0_38 = arith.constant 0 : index
      %c0_39 = arith.constant 0 : index
      %c0_40 = arith.constant 0 : index
      %c0_41 = arith.constant 0 : index
      %58 = vector.load %arg14[%c0_38, %c0_39, %c0_40, %c0_41] : memref<1x1x8x128xf32, #tpu.memory_space<vmem>>, vector<1x1x8x128xf32>
      %59 = vector.shape_cast %58 : vector<1x1x8x128xf32> to vector<8x128xf32>
      %60 = vector.shape_cast %57 : vector<8x128xf32> to vector<1x1x8x128xf32>
      tpu.vector_store %arg14[%c0_38, %c0_39, %c0_40, %c0_41], %60 {strides = array<i32>} : memref<1x1x8x128xf32, #tpu.memory_space<vmem>>, vector<1x1x8x128xf32>,
    } else {
    }
    return
  }
  func.func @transform_0(%arg0: i32, %arg1: i32, %arg2: i32) -> (i32, i32, i32) {
    %c0_i32 = arith.constant 0 : i32
    return %arg1, %arg0, %arg2 : i32, i32, i32
  }
  func.func @transform_1(%arg0: i32, %arg1: i32, %arg2: i32) -> (i32, i32) {
    %c0_i32 = arith.constant 0 : i32
    %c0_i32_0 = arith.constant 0 : i32
    %c0_i32_1 = arith.constant 0 : i32
    return %c0_i32, %c0_i32_0 : i32, i32
  }
  func.func @transform_2(%arg0: i32, %arg1: i32, %arg2: i32) -> (i32, i32) {
    %c0_i32 = arith.constant 0 : i32
    %c0_i32_0 = arith.constant 0 : i32
    return %arg0, %c0_i32 : i32, i32
  }
  func.func @transform_3(%arg0: i32, %arg1: i32, %arg2: i32) -> (i32, i32) {
    %c0_i32 = arith.constant 0 : i32
    %c0_i32_0 = arith.constant 0 : i32
    %c0_i32_1 = arith.constant 0 : i32
    return %c0_i32, %c0_i32_0 : i32, i32
  }
  func.func @transform_4(%arg0: i32, %arg1: i32, %arg2: i32) -> (i32, i32) {
    %c0_i32 = arith.constant 0 : i32
    %c0_i32_0 = arith.constant 0 : i32
    %c0_i32_1 = arith.constant 0 : i32
    return %c0_i32, %c0_i32_0 : i32, i32
  }
  func.func @transform_5(%arg0: i32, %arg1: i32, %arg2: i32) -> (i32, i32) {
    %c0_i32 = arith.constant 0 : i32
    %c0_i32_0 = arith.constant 0 : i32
    %c0_i32_1 = arith.constant 0 : i32
    return %c0_i32, %c0_i32_0 : i32, i32
  }
  func.func @transform_6(%arg0: i32, %arg1: i32, %arg2: i32) -> (i32, i32) {
    %c0_i32 = arith.constant 0 : i32
    %c0_i32_0 = arith.constant 0 : i32
    %c0_i32_1 = arith.constant 0 : i32
    return %c0_i32, %c0_i32_0 : i32, i32
  }
  func.func @transform_7(%arg0: i32, %arg1: i32, %arg2: i32) -> (i32, i32) {
    %c0_i32 = arith.constant 0 : i32
    %c0_i32_0 = arith.constant 0 : i32
    %c0_i32_1 = arith.constant 0 : i32
    return %c0_i32, %c0_i32_0 : i32, i32
  }
  func.func @transform_8(%arg0: i32, %arg1: i32, %arg2: i32) -> (i32, i32) {
    %c0_i32 = arith.constant 0 : i32
    %c0_i32_0 = arith.constant 0 : i32
    %c0_i32_1 = arith.constant 0 : i32
    return %c0_i32, %c0_i32_0 : i32, i32
  }
  func.func @transform_9(%arg0: i32, %arg1: i32, %arg2: i32) -> (i32, i32) {
    %c0_i32 = arith.constant 0 : i32
    %c0_i32_0 = arith.constant 0 : i32
    %c0_i32_1 = arith.constant 0 : i32
    return %c0_i32, %c0_i32_0 : i32, i32
  }
  func.func @transform_10(%arg0: i32, %arg1: i32, %arg2: i32) -> (i32, i32, i32) {
    %c0_i32 = arith.constant 0 : i32
    %c0_i32_0 = arith.constant 0 : i32
    return %arg1, %arg0, %c0_i32 : i32, i32, i32
  }
  func.func @transform_11(%arg0: i32, %arg1: i32, %arg2: i32) -> (i32, i32, i32, i32) {
    %c0_i32 = arith.constant 0 : i32
    %c0_i32_0 = arith.constant 0 : i32
    %c0_i32_1 = arith.constant 0 : i32
    return %arg1, %arg0, %c0_i32, %c0_i32_0 : i32, i32, i32, i32
  }
}

</mosaic_0001>

<bundles_post_ra>
// kernel: tpu_custom_call.1
= control target key start
LH: loop header
LB: loop body
LE: loop exit
PB: predicated region body
PF: predicated region fallthrough
CT: control target
= control target key end

     0   :  { %s3149_s0 = inlined_call_operand.hbm [shape: bf16[3,128,128], index: 0, kind: input, shape index: {}]   ;;  %s3150_s1 = inlined_call_operand.hbm [shape: bf16[128,128], index: 1, kind: input, shape index: {}]   ;;  %s3151_s2 = inlined_call_operand.hbm [shape: f32[128,128], index: 2, kind: input, shape index: {}]   ;;  %s3152_s3 = inlined_call_operand.hbm [shape: f32[128,128], index: 3, kind: input, shape index: {}]   ;;  %s3153_s4 = inlined_call_operand.vmem [shape: f32[1,128], index: 4, kind: input, shape index: {}]   ;;  %s3154_s5 = inlined_call_operand.hbm [shape: f32[128,128], index: 5, kind: input, shape index: {}]   ;;  %s3155_s6 = inlined_call_operand.vmem [shape: f32[1,128], index: 6, kind: input, shape index: {}]   ;;  %s3156_s7 = inlined_call_operand.hbm [shape: f32[128,128], index: 7, kind: input, shape index: {}]   ;;  %s3157_s8 = inlined_call_operand.vmem [shape: f32[1,128], index: 8, kind: input, shape index: {}]   ;;  %s3158_s9 = inlined_call_operand.vmem [shape: f32[1,128], index: 9, kind: input, shape index: {}]   ;;  %s3159_s10 = inlined_call_operand.hbm [shape: bf16[3,128,128], index: 10, kind: output, shape index: {0}]   ;;  %s3160_s11 = inlined_call_operand.hbm [shape: f32[3,1,8,128], index: 11, kind: output, shape index: {1}]  }
   0x1   :  { %3168 = sst [smem:[#allocation24_spill]] %s3150_s1 }
   0x2   :  { %3169 = sst [smem:[#allocation25_spill]] %s3151_s2 }
   0x3   :  { %3170 = sst [smem:[#allocation26_spill]] %s3152_s3 }
   0x4   :  { %3171 = sst [smem:[#allocation27_spill]] %s3154_s5 }
   0x5   :  { %3172 = sst [smem:[#allocation28_spill]] %s3156_s7 }
   0x6   :  { %3173 = sst [smem:[#allocation29_spill]] %s3159_s10 }
   0x7   :  { %3174 = sst [smem:[#allocation30_spill]] %s3160_s11 }
   0x8   :  { %17 = vsyncpa [#allocation4], 0 }
   0x9   :  { %19 = vsyncpa [#allocation4 + $0x1], 0 }
   0xa   :  { %20 = vsyncpa [#allocation7], 0 }
   0xb   :  { %21 = vsyncpa [#allocation10], 0 }
   0xc   :  { %22 = vsyncpa [#allocation13], 0 }
   0xd   :  { %23 = vsyncpa [#allocation5], 0 }
   0xe   :  { %25 = vsyncpa [#allocation5 + $0x1], 0 }
   0xf   :  { %26 = vsyncpa [#allocation16], 0 }
  0x10   :  { %28 = vsyncpa [#allocation16 + $0x1], 0  ;;  %s2815_s17 = smov 0   ;;  %s2817_s18 = smov 0  }
  0x11   :  { %s2819_s19 = smov 0   ;;  %s2821_s20 = smov 0  }
  0x12   :  { %s2823_s21 = smov 0   ;;  %s2825_s22 = smov 0  }
  0x13 LB: > { %s3161_s23 = sadd.s32 4294967295, %s2739_s22   ;;  %p1874_p0 = scmp.ge.s32.totalorder %s2739_s22, 1  ;;  %s2739_s22 = sphi %s2825_s22, %s34_s22   ;;  %s2735_s21 = sphi %s2823_s21, %s3202_s21   ;;  %s2731_s20 = sphi %s2821_s20, %s3201_s20   ;;  %s2727_s19 = sphi %s2819_s19, %s3200_s19   ;;  %s2723_s18 = sphi %s2817_s18, %s3199_s18   ;;  %s2719_s17 = sphi %s2815_s17, %s3198_s17  }
  0x14   : > { %p2849_p1 = scmp.eq.s32.totalorder %s3161_s23, 0  ;;  %p338_p2 = scmp.lt.s32.totalorder %s2739_s22, 4 }
  0x15   : > { %s2741_s26 = smov [#allocation6]   ;;  %s2742_s29 = smov [#allocation9]  }
  0x16   : > { %p2854_p3 = pnand %p1874_p0, %p338_p2  ;;  %s350_s27 = sshll.u32 %s2741_s26, 4  ;;  %s351_s27 = int_to_ptr.vmem [resolvable:$true] %s350_s27 }
  0x17   : > { %s379_s30 = sshll.u32 %s2742_s29, 4  ;;  %s2470_s13 = scalar_lea.vmem %s351_s27, 1024  ;;  %s380_s30 = int_to_ptr.vmem [resolvable:$true] %s379_s30 }
  0x18   : > { %p2341_p4 = pneg %p2854_p3  ;;  %p2471_p7 = scmp.ne.s32.totalorder %s351_s27, %s2470_s13 }
  0x19   : > { %p2478_p10 = scmp.lt.s32.totalorder %s351_s27, %s351_s27  ;;  %p2479_p11 = scmp.lt.s32.totalorder %s2470_s13, %s2470_s13 }
  0x1a   : > { %p2862_p5 = pnand %p2341_p4, %p2849_p1 }
  0x1b   : > { %p2480_p12 = por %p2479_p11, %p2478_p10 }
  0x1c   : > { %p2868_p6 = pneg %p2862_p5 }
  0x1e   : > { %p2473_p8 = pnand %p2471_p7, %p2868_p6 }
  0x20   : > { %p2474_p9 = pneg %p2473_p8 }
  0x22   : > { %p2481_p13 = pnand %p2480_p12, %p2474_p9 }
  0x24   : > { %2484 = shalt.err (!%p2481_p13)
}
  0x25   : > { %s3164_s14 = smov 64   ;;  %s3165_s15 = smov 4  }
  0x26   : > { %s3179_s1 = sld [smem:[#allocation24_spill]]  ;;  %s2745_s29 = smov [#allocation8]  }
  0x27   : > { %s366_s23 = sshll.u32 %s2745_s29, 4  ;;  %s2496_s11 = scalar_lea.vmem %s380_s30, 2048  ;;  %s367_s23 = int_to_ptr.vmem [resolvable:$true] %s366_s23 }
  0x28   : > { %p2497_p0 = scmp.ne.s32.totalorder %s380_s30, %s2496_s11  ;;  %p2504_p7 = scmp.lt.s32.totalorder %s380_s30, %s380_s30 }
  0x29   : > { %p2505_p8 = scmp.lt.s32.totalorder %s2496_s11, %s2496_s11 }
  0x2a   : > { %p2499_p2 = pnand %p2497_p0, %p2868_p6 }
  0x2b   : > { %p2506_p9 = por %p2505_p8, %p2504_p7 }
  0x2c   : > { %2344 = dma.hbm_to_vmem [thread:$0]  (!%p2862_p5), %s3179_s1, 1024, %s351_s27, [#allocation7], %s3164_s14, %s3164_s14, %s3165_s15  }
  0x2d   : > { %p2500_p4 = pneg %p2499_p2 }
  0x2f   : > { %p2507_p10 = pnand %p2506_p9, %p2500_p4 }
  0x31   : > { %2510 = shalt.err (!%p2507_p10)
}
  0x32   : > { %s2746_s13 = smov 128   ;;  %s2747_s10 = smov 8  }
  0x33   : > { %s3180_s3 = sld [smem:[#allocation26_spill]]  ;;  %s2522_s26 = scalar_lea.vmem %s367_s23, 2048 }
  0x34   : > { %p2523_p11 = scmp.ne.s32.totalorder %s367_s23, %s2522_s26  ;;  %p2530_p0 = scmp.lt.s32.totalorder %s367_s23, %s367_s23 }
  0x35   : > { %p2531_p2 = scmp.lt.s32.totalorder %s2522_s26, %s2522_s26 }
  0x36   : > { %p2525_p12 = pnand %p2523_p11, %p2868_p6 }
  0x37   : > { %p2532_p4 = por %p2531_p2, %p2530_p0 }
  0x38   : > { %p2526_p13 = pneg %p2525_p12 }
  0x39   : > { %2350 = dma.hbm_to_vmem [thread:$0]  (!%p2862_p5), %s3180_s3, 2048, %s380_s30, [#allocation10], %s2746_s13, %s2746_s13, %s2747_s10  }
  0x3a   : > { %p2533_p7 = pnand %p2532_p4, %p2526_p13 }
  0x3c   : > { %2536 = shalt.err (!%p2533_p7)
}
  0x3d   : > { %s3181_s2 = sld [smem:[#allocation25_spill]]  ;;  %s2748_s30 = smov [#allocation11]  }
  0x3e   : > { %s395_s27 = sshll.u32 %s2748_s30, 4  ;;  %s2749_s16 = smov [#allocation12]   ;;  %s396_s27 = int_to_ptr.vmem [resolvable:$true] %s395_s27 }
  0x3f   : > { %s411_s14 = sshll.u32 %s2749_s16, 4  ;;  %s2548_s15 = scalar_lea.vmem %s396_s27, 2048  ;;  %s412_s14 = int_to_ptr.vmem [resolvable:$true] %s411_s14 }
  0x40   : > { %p2549_p8 = scmp.ne.s32.totalorder %s396_s27, %s2548_s15  ;;  %p2556_p11 = scmp.lt.s32.totalorder %s396_s27, %s396_s27 }
  0x41   : > { %p2557_p12 = scmp.lt.s32.totalorder %s2548_s15, %s2548_s15 }
  0x42   : > { %p2551_p9 = pnand %p2549_p8, %p2868_p6 }
  0x43   : > { %2347 = dma.hbm_to_vmem [thread:$0]  (!%p2862_p5), %s3181_s2, 2048, %s367_s23, [#allocation7], %s2746_s13, %s2746_s13, %s2747_s10  }
  0x44   : > { %p2552_p10 = pneg %p2551_p9  ;;  %p2558_p13 = por %p2557_p12, %p2556_p11 }
  0x46   : > { %p2559_p0 = pnand %p2558_p13, %p2552_p10 }
  0x48   : > { %2562 = shalt.err (!%p2559_p0)
}
  0x49   : > { %s3182_s5 = sld [smem:[#allocation27_spill]]  ;;  %s2574_s11 = scalar_lea.vmem %s412_s14, 2048 }
  0x4a   : > { %p2575_p2 = scmp.ne.s32.totalorder %s412_s14, %s2574_s11  ;;  %p2582_p8 = scmp.lt.s32.totalorder %s412_s14, %s412_s14 }
  0x4b   : > { %p2583_p9 = scmp.lt.s32.totalorder %s2574_s11, %s2574_s11 }
  0x4c   : > { %p2577_p4 = pnand %p2575_p2, %p2868_p6 }
  0x4d   : > { %p2584_p10 = por %p2583_p9, %p2582_p8 }
  0x4e   : > { %p2578_p7 = pneg %p2577_p4 }
  0x4f   : > { %2353 = dma.hbm_to_vmem [thread:$0]  (!%p2862_p5), %s3182_s5, 2048, %s396_s27, [#allocation10], %s2746_s13, %s2746_s13, %s2747_s10  }
  0x50   : > { %p2585_p11 = pnand %p2584_p10, %p2578_p7 }
  0x52   : > { %2588 = shalt.err (!%p2585_p11)
}
  0x53   : > { %s3183_s7 = sld [smem:[#allocation28_spill]]  ;;  %s1873_s28 = sadd.s32 4294967294, %s2739_s22  }
  0x54   : > { %s49_s12 = sadd.s32 1, %s2735_s21  ;;  %s64_s30 = sadd.s32 1, %s2727_s19 }
  0x55   : > { %p51_p6 = scmp.ge.s32.totalorder %s49_s12, 3  ;;  %p71_p12 = scmp.ne.s32.totalorder %s2727_s19, %s2723_s18 }
  0x56   : > { %p72_p13 = scmp.eq.s32.totalorder %s2739_s22, 0  ;;  %p77_p0 = scmp.ne.s32.totalorder %s2723_s18, %s2719_s17 }
  0x57   : > { %s3204_s12 = smov (%p51_p6, %s49_s12), 0  ;;  %p303_p8 = scmp.eq.s32.totalorder %s1873_s28, 2 }
  0x58   : > { %3184 = sst [smem:[#allocation23_spill]] %s3204_s12  ;;  %p2932_p2 = por %p72_p13, %p71_p12 }
  0x59   : > { %2356 = dma.hbm_to_vmem [thread:$0]  (!%p2862_p5), %s3183_s7, 2048, %s412_s14, [#allocation13], %s2746_s13, %s2746_s13, %s2747_s10  }
  0x5a   : > { %p2938_p5 = por %p2849_p1, %p77_p0  ;;  %s57_s14 = ssub.s32 %s2735_s21, %s3204_s12 }
  0x5b   : > { %s3187_s13 = sadd.s32 4294967295, %s2739_s22   ;;  %p62_p7 = scmp.eq.s32.totalorder %s57_s14, 0 }
  0x5c   : > { %p297_p4 = scmp.eq.s32.totalorder %s3187_s13, 2  ;;  %p2373_p10 = scmp.lt.s32.totalorder %s2739_s22, 3 }
  0x5d   : > { %s2952_s23 = scalar_select %p62_p7, %s2727_s19, %s64_s30  }
  0x5e   : > { %p2946_p9 = por %p297_p4, %p71_p12  ;;  %p2954_p11 = por %p303_p8, %p77_p0 }
  0x5f   : > { %s431_s11 = sand.u32 1, %s2727_s19   ;;  %s1936_s29 = sshll.u32 %s2735_s21, 10 }
  0x60   : > { %s3188_s16 = scalar_select %p2946_p9, 1, 0 }
  0x61   : > { %s3189_s26 = scalar_select %p2954_p11, 1, 0 }
  0x62   : > { %s1881_s15 = sshll.u32 %s431_s11, 6  ;;  %s444_s13 = scalar_lea.hbm %s3149_s0, %s1936_s29 }
  0x63   : > { %s435_s14 = scalar_lea.vmem [#allocation3], %s1881_s15  ;;  %p2965_p6 = pnand %p2373_p10, %p2932_p2 }
  0x64   : > { %s445_s28 = sshll.u32 %s435_s14, 4  ;;  %s432_s30 = scalar_lea.sflag [#allocation4], %s431_s11  ;;  %s446_s28 = int_to_ptr.vmem [resolvable:$true] %s445_s28 }
  0x65   : > { %p2591_p12 = pneg %p2965_p6  ;;  %s2602_s5 = scalar_lea.vmem %s446_s28, 1024 }
  0x66   : > { %p2603_p13 = scmp.ne.s32.totalorder %s446_s28, %s2602_s5  ;;  %s2750_s7 = smov [#allocation3]  }
  0x67   : > { %s2607_s12 = sshll.u32 %s2750_s7, 4  ;;  %s2608_s12 = int_to_ptr.vmem [resolvable:$false] %s2607_s12 }
  0x68   : > { %p2605_p0 = pnand %p2603_p13, %p2591_p12  ;;  %s2609_s1 = scalar_lea.vmem %s2608_s12, 2048 }
  0x69   : > { %p2610_p7 = scmp.lt.s32.totalorder %s446_s28, %s2608_s12  ;;  %p2611_p8 = scmp.lt.s32.totalorder %s2609_s1, %s2602_s5 }
  0x6a   : > { %p2606_p4 = pneg %p2605_p0 }
  0x6b   : > { %p2612_p11 = por %p2611_p8, %p2610_p7 }
  0x6d   : > { %p2613_p9 = pnand %p2612_p11, %p2606_p4 }
  0x6f   : > { %2616 = shalt.err (!%p2613_p9)
}
  0x70   : > { %s3191_s2 = smov 4   ;;  %s3192_s27 = smov 64  }
  0x71   : > { %2360 = dma.hbm_to_vmem [thread:$0]  (!%p2965_p6), %s444_s13, 1024, %s446_s28, %s432_s30, %s3192_s27, %s3192_s27, %s3191_s2  }
  0x72   : > { %457 = sbr.rel (%p2854_p3) target bundleno = 1332 (0x534), region = 60  ;;  %s2979_s11 = sand.u32 (!%p2854_p3), 1, %s2723_s18  }
  0x73   : > { %s1885_s5 = sshll.u32 (!%p2854_p3), %s2979_s11, 6  ;;  %s460_s7 = scalar_lea.sflag (!%p2854_p3), [#allocation4], %s2979_s11 }
  0x74   : > { %s2985_s12 = scalar_lea.vmem (!%p2854_p3), [#allocation3], %s1885_s5 }
  0x77   : > { %2694 = dma.done.wait (%p2938_p5), %s460_s7, 1024  }
  0x78   : > { %2696 = vsyncadd (%p2938_p5), %s460_s7, 4294966272 }
  0x79   : > { %2698 = dma.done.wait (%p2849_p1), [#allocation7], 3072  }
  0x7a   : > { %2700 = vsyncadd (%p2849_p1), [#allocation7], 4294964224 }
  0x7b   : > { %2702 = dma.done.wait (%p2849_p1), [#allocation10], 4096  }
  0x7c   : > { %2704 = vsyncadd (%p2849_p1), [#allocation10], 4294963200 }
  0x7d   : > { %2706 = dma.done.wait (%p2849_p1), [#allocation13], 2048  }
  0x7e   : > { %2708 = vsyncadd (%p2849_p1), [#allocation13], 4294965248  ;;  %v2439_v0 = vld [vmem:[#allocation6 + $0x38] sm:$0xff]   ;;  %v2440_v1 = vld [vmem:[#allocation6 + $0x30] sm:$0xff]   ;;  %s3043_s15 = scalar_lea.vmem [#allocation14], %s1885_s5  ;;  %vm1618_vm0 = vcmask 7168  }
  0x7f   : > { %2113 = vmatprep.subr.bf16.mxu0 %v2439_v0  ;;  %v2441_v2 = vld [vmem:[#allocation6 + $0x28] sm:$0xff]   ;;  %v2442_v3 = vld [vmem:[#allocation6 + $0x20] sm:$0xff]   ;;  %v880_v5 = vld [vmem:[#allocation9 + $0x78] sm:$0xff]  ;;  %s1682_s30 = sshll.u32 %s3043_s15, 4  ;;  %s1953_s1 = sshll.u32 %s2731_s20, 10  ;;  %s3073_s30 = int_to_ptr.vmem [resolvable:$true] %s1682_s30 }
  0x80   : > { %2114 = vmatpush3.bf16.msra.mxu0 %v2439_v0  ;;  %v2447_v4 = vld [vmem:[%s2985_s12] sm:$0xff]   ;;  %v879_v6 = vld [vmem:[#allocation9 + $0x70] sm:$0xff]  ;;  %2145 = vmatprep.subr.mxu1 %v880_v5  ;;  %v2443_v7 = vld [vmem:[#allocation6 + $0x18] sm:$0xff]   ;;  %s3193_s5 = sld [smem:[#allocation29_spill]]  ;;  %s2617_s3 = scalar_lea.vmem %s3073_s30, 1024 }
  0x81   : > { %2115 = vmatprep.subr.bf16.mxu0 %v2440_v1  ;;  %2129 = vmatprep.mubr.bf16.mxu0 %v2447_v4  ;;  %v878_v8 = vld [vmem:[#allocation9 + $0x68] sm:$0xff]  ;;  %v877_v9 = vld [vmem:[#allocation9 + $0x60] sm:$0xff]  ;;  %v2444_v10 = vld [vmem:[#allocation6 + $0x10] sm:$0xff]   ;;  %p2618_p1 = scmp.ne.s32.totalorder %s3073_s30, %s2617_s3  ;;  %p3194_p3 = scmp.ne.s32.totalorder %s3188_s16, 0 }
  0x82   : > { %2146 = vmatpush3.msra.mxu1 %v880_v5  ;;  %v876_v11 = vld [vmem:[#allocation9 + $0x58] sm:$0xff]  ;;  %v875_v12 = vld [vmem:[#allocation9 + $0x50] sm:$0xff]  ;;  %v2445_v13 = vld [vmem:[#allocation6 + $0x8] sm:$0xff]   ;;  %s2751_s24 = smov [#allocation14]  }
  0x83   : > { %2147 = vmatprep.subr.mxu1 %v879_v6  ;;  %v874_v14 = vld [vmem:[#allocation9 + $0x48] sm:$0xff]  ;;  %v873_v15 = vld [vmem:[#allocation9 + $0x40] sm:$0xff]  ;;  %v872_v17 = vld [vmem:[#allocation9 + $0x38] sm:$0xff]  ;;  %p2619_p2 = pnand %p2618_p1, %p3194_p3  ;;  %s2621_s25 = sshll.u32 %s2751_s24, 4  ;;  %s2622_s25 = int_to_ptr.vmem [resolvable:$false] %s2621_s25 }
  0x84   : > { %2116 = vmatpush3.bf16.msra.mxu0 %v2440_v1  ;;  %2148 = vmatpush3.msra.mxu1 %v879_v6  ;;  %v2446_v16 = vld [vmem:[#allocation6] sm:$0xff]   ;;  %v871_v18 = vld [vmem:[#allocation9 + $0x30] sm:$0xff]  ;;  %v870_v19 = vld [vmem:[#allocation9 + $0x28] sm:$0xff]  ;;  %s2623_s10 = scalar_lea.vmem %s2622_s25, 2048  ;;  %p2624_p9 = scmp.lt.s32.totalorder %s3073_s30, %s2622_s25 }
  0x85   : > { %2117 = vmatprep.subr.bf16.mxu0 %v2441_v2  ;;  %2149 = vmatprep.subr.mxu1 %v878_v8  ;;  %v2448_v20 = vld [vmem:[%s2985_s12 + $0x8] sm:$0xff]   ;;  %v869_v21 = vld [vmem:[#allocation9 + $0x20] sm:$0xff]  ;;  %v868_v22 = vld [vmem:[#allocation9 + $0x18] sm:$0xff]  ;;  %p2620_p5 = pneg %p2619_p2  ;;  %p2625_p10 = scmp.lt.s32.totalorder %s2623_s10, %s2617_s3 }
  0x86   : > { %2150 = vmatpush3.msra.mxu1 %v878_v8  ;;  %v867_v23 = vld [vmem:[#allocation9 + $0x10] sm:$0xff]  ;;  %v866_v24 = vld [vmem:[#allocation9 + $0x8] sm:$0xff]  ;;  %v865_v25 = vld [vmem:[#allocation9] sm:$0xff]  ;;  %s3078_s7 = scalar_lea.hbm %s3193_s5, %s1953_s1 }
  0x87   : > { %2151 = vmatprep.subr.mxu1 %v877_v9  ;;  %v2449_v26 = vld [vmem:[%s2985_s12 + $0x10] sm:$0xff]   ;;  %v2450_v27 = vld [vmem:[%s2985_s12 + $0x18] sm:$0xff]   ;;  %v2451_v28 = vld [vmem:[%s2985_s12 + $0x20] sm:$0xff]   ;;  %p2626_p11 = por %p2625_p10, %p2624_p9 }
  0x88   : > { %2118 = vmatpush3.bf16.msra.mxu0 %v2441_v2  ;;  %2152 = vmatpush3.msra.mxu1 %v877_v9  ;;  %v1064_v29 = vld [vmem:[#allocation11 + $0x78] sm:$0xff]  ;;  %v1063_v30 = vld [vmem:[#allocation11 + $0x70] sm:$0xff]  ;;  %v1062_v31 = vld [vmem:[#allocation11 + $0x68] sm:$0xff] }
  0x89   : > { %2119 = vmatprep.subr.bf16.mxu0 %v2442_v3  ;;  %2153 = vmatprep.subr.mxu1 %v876_v11  ;;  %v1061_v32 = vld [vmem:[#allocation11 + $0x60] sm:$0xff]  ;;  %v2452_v33 = vld [vmem:[%s2985_s12 + $0x28] sm:$0xff]   ;;  %v2453_v34 = vld [vmem:[%s2985_s12 + $0x30] sm:$0xff]   ;;  %p2627_p6 = pnand %p2626_p11, %p2620_p5 }
  0x8a   : > { %2154 = vmatpush3.msra.mxu1 %v876_v11  ;;  %v1060_v35 = vld [vmem:[#allocation11 + $0x58] sm:$0xff]  ;;  %v1059_v36 = vld [vmem:[#allocation11 + $0x50] sm:$0xff]  ;;  %v1058_v37 = vld [vmem:[#allocation11 + $0x48] sm:$0xff] }
  0x8b   : > { %2155 = vmatprep.subr.mxu1 %v875_v12  ;;  %v1057_v38 = vld [vmem:[#allocation11 + $0x40] sm:$0xff]  ;;  %v2454_v39 = vld [vmem:[%s2985_s12 + $0x38] sm:$0xff]   ;;  %v1055_v41 = vld [vmem:[#allocation11 + $0x30] sm:$0xff]  ;;  %s1662_s12 = scalar_lea.sflag [#allocation5], %s2979_s11 }
  0x8c   : > { %2120 = vmatpush3.bf16.msra.mxu0 %v2442_v3  ;;  %2156 = vmatpush3.msra.mxu1 %v875_v12  ;;  %v1056_v40 = vld [vmem:[#allocation11 + $0x38] sm:$0xff]  ;;  %v1054_v42 = vld [vmem:[#allocation11 + $0x28] sm:$0xff]  ;;  %v1053_v43 = vld [vmem:[#allocation11 + $0x20] sm:$0xff] }
  0x8d   : > { %2121 = vmatprep.subr.bf16.mxu0 %v2443_v7  ;;  %2157 = vmatprep.subr.mxu1 %v874_v14  ;;  %v1052_v44 = vld [vmem:[#allocation11 + $0x18] sm:$0xff]  ;;  %v536_v46 = vld [vmem:[#allocation8] sm:$0xff]  ;;  %v537_v50 = vld [vmem:[#allocation8 + $0x8] sm:$0xff] }
  0x8e   : > { %2158 = vmatpush3.msra.mxu1 %v874_v14  ;;  %v538_v51 = vld [vmem:[#allocation8 + $0x10] sm:$0xff]  ;;  %v539_v55 = vld [vmem:[#allocation8 + $0x18] sm:$0xff]  ;;  %v1050_v58 = vld [vmem:[#allocation11 + $0x8] sm:$0xff] }
  0x8f   : > { %2159 = vmatprep.subr.mxu1 %v873_v15  ;;  %v1051_v57 = vld [vmem:[#allocation11 + $0x10] sm:$0xff]  ;;  %v1049_v59 = vld [vmem:[#allocation11] sm:$0xff]  ;;  %v541_v2 = vld [vmem:[#allocation8 + $0x28] sm:$0xff] }
  0x90   : > { %2122 = vmatpush3.bf16.msra.mxu0 %v2443_v7  ;;  %2160 = vmatpush3.msra.mxu1 %v873_v15  ;;  %v540_v61 = vld [vmem:[#allocation8 + $0x20] sm:$0xff]  ;;  %v542_v63 = vld [vmem:[#allocation8 + $0x30] sm:$0xff]  ;;  %v1328_v3 = vld [vmem:[#allocation12 + $0x78] sm:$0xff] }
  0x91   : > { %2123 = vmatprep.subr.bf16.mxu0 %v2444_v10  ;;  %2161 = vmatprep.subr.mxu1 %v872_v17  ;;  %v1327_v4 = vld [vmem:[#allocation12 + $0x70] sm:$0xff]  ;;  %v543_v6 = vld [vmem:[#allocation8 + $0x38] sm:$0xff]  ;;  %v1326_v8 = vld [vmem:[#allocation12 + $0x68] sm:$0xff] }
  0x92   : > { %2162 = vmatpush3.msra.mxu1 %v872_v17  ;;  %v544_v11 = vld [vmem:[#allocation8 + $0x40] sm:$0xff]  ;;  %v1324_v15 = vld [vmem:[#allocation12 + $0x58] sm:$0xff] }
  0x93   : > { %2163 = vmatprep.subr.mxu1 %v871_v18  ;;  %v1325_v12 = vld [vmem:[#allocation12 + $0x60] sm:$0xff] }
  0x94   : > { %2124 = vmatpush3.bf16.msra.mxu0 %v2444_v10  ;;  %2164 = vmatpush3.msra.mxu1 %v871_v18 }
  0x95   : > { %2125 = vmatprep.subr.bf16.mxu0 %v2445_v13  ;;  %2165 = vmatprep.subr.mxu1 %v870_v19 }
  0x96   : > { %2166 = vmatpush3.msra.mxu1 %v870_v19  ;;  %v545_v19 = vld [vmem:[#allocation8 + $0x48] sm:$0xff] }
  0x97   : > { %2167 = vmatprep.subr.mxu1 %v869_v21 }
  0x98   : > { %2126 = vmatpush3.bf16.msra.mxu0 %v2445_v13  ;;  %2168 = vmatpush3.msra.mxu1 %v869_v21 }
  0x99   : > { %2127 = vmatprep.subr.bf16.mxu0 %v2446_v16  ;;  %2169 = vmatprep.subr.mxu1 %v868_v22 }
  0x9a   : > { %2170 = vmatpush3.msra.mxu1 %v868_v22  ;;  %v547_v22 = vld [vmem:[#allocation8 + $0x58] sm:$0xff] }
  0x9b   : > { %2171 = vmatprep.subr.mxu1 %v867_v23 }
  0x9c   : > { %2128 = vmatpush3.bf16.msra.mxu0 %v2446_v16  ;;  %2172 = vmatpush3.msra.mxu1 %v867_v23  ;;  %v546_v16 = vld [vmem:[#allocation8 + $0x50] sm:$0xff] }
  0x9d   : > { %2173 = vmatprep.subr.mxu1 %v866_v24  ;;  %2201 = vmatprep.subr.mxu0 %v1064_v29 }
  0x9e   : > { %2174 = vmatpush3.msra.mxu1 %v866_v24  ;;  %v1322_v24 = vld [vmem:[#allocation12 + $0x48] sm:$0xff] }
  0x9f   : > { %2130 = vmatmul.mubr.bf16.vlgmr.msra.gmra.mxu0 %v2448_v20  ;;  %2175 = vmatprep.subr.mxu1 %v865_v25  ;;  %v1323_v20 = vld [vmem:[#allocation12 + $0x50] sm:$0xff] }
  0xa0   : > { %2176 = vmatpush3.msra.mxu1 %v865_v25  ;;  %2133 = vmatprep.mubr.bf16.mxu0 %v2449_v26 }
  0xa1   : > { %2202 = vmatpush3.msra.mxu0 %v1064_v29  ;;  %2257 = vmatprep.subr.mxu1 %v1328_v3 }
  0xa2   : > { %2203 = vmatprep.subr.mxu0 %v1063_v30 }
  0xa3   : > { %2204 = vmatpush3.msra.mxu0 %v1063_v30 }
  0xa4   : > { %2205 = vmatprep.subr.mxu0 %v1062_v31 }
  0xa5   : > { %2206 = vmatpush3.msra.mxu0 %v1062_v31  ;;  %v1320_v31 = vld [vmem:[#allocation12 + $0x38] sm:$0xff] }
  0xa6   : > { %2207 = vmatprep.subr.mxu0 %v1061_v32 }
  0xa7   : > { %2134 = vmatmul.mubr.bf16.gmra.mxu0 %v2450_v27  ;;  %v548_v27 = vld [vmem:[#allocation8 + $0x60] sm:$0xff] }
  0xa8   : > { %2137 = vmatprep.mubr.bf16.mxu0 %v2451_v28  ;;  %2208 = vmatpush3.msra.mxu0 %v1061_v32  ;;  %v1321_v28 = vld [vmem:[#allocation12 + $0x40] sm:$0xff]  ;;  %v550_v32 = vld [vmem:[#allocation8 + $0x70] sm:$0xff] }
  0xa9   : > { %2209 = vmatprep.subr.mxu0 %v1060_v35 }
  0xaa   : > { %2210 = vmatpush3.msra.mxu0 %v1060_v35  ;;  %v549_v35 = vld [vmem:[#allocation8 + $0x68] sm:$0xff] }
  0xab   : > { %2211 = vmatprep.subr.mxu0 %v1059_v36 }
  0xac   : > { %2212 = vmatpush3.msra.mxu0 %v1059_v36  ;;  %v1319_v36 = vld [vmem:[#allocation12 + $0x30] sm:$0xff] }
  0xad   : > { %2213 = vmatprep.subr.mxu0 %v1058_v37 }
  0xae   : > { %2214 = vmatpush3.msra.mxu0 %v1058_v37 }
  0xaf   : > { %2138 = vmatmul.mubr.bf16.gmra.mxu0 %v2452_v33  ;;  %2215 = vmatprep.subr.mxu0 %v1057_v38 }
  0xb0   : > { %2141 = vmatprep.mubr.bf16.mxu0 %v2453_v34  ;;  %2216 = vmatpush3.msra.mxu0 %v1057_v38  ;;  %v551_v38 = vld [vmem:[#allocation8 + $0x78] sm:$0xff] }
  0xb1   : > { %2217 = vmatprep.subr.mxu0 %v1056_v40 }
  0xb2   : > { %2218 = vmatpush3.msra.mxu0 %v1056_v40  ;;  %v1318_v40 = vld [vmem:[#allocation12 + $0x28] sm:$0xff] }
  0xb3   : > { %2219 = vmatprep.subr.mxu0 %v1055_v41 }
  0xb4   : > { %2220 = vmatpush3.msra.mxu0 %v1055_v41 }
  0xb5   : > { %2221 = vmatprep.subr.mxu0 %v1054_v42 }
  0xb6   : > { %2222 = vmatpush3.msra.mxu0 %v1054_v42  ;;  %v1317_v42 = vld [vmem:[#allocation12 + $0x20] sm:$0xff] }
  0xb7   : > { %2142 = vmatmul.mubr.bf16.gmra.mxu0 %v2454_v39  ;;  %2223 = vmatprep.subr.mxu0 %v1053_v43 }
  0xb8   : > { %2224 = vmatpush3.msra.mxu0 %v1053_v43 }
  0xb9   : > { %2225 = vmatprep.subr.mxu0 %v1052_v44 }
  0xba   : > { %2226 = vmatpush3.msra.mxu0 %v1052_v44  ;;  %v1316_v44 = vld [vmem:[#allocation12 + $0x18] sm:$0xff] }
  0xbb   : > { %2227 = vmatprep.subr.mxu0 %v1051_v57 }
  0xbc   : > { %2228 = vmatpush3.msra.mxu0 %v1051_v57 }
  0xbd   : > { %2229 = vmatprep.subr.mxu0 %v1050_v58 }
  0xbe   : > { %2230 = vmatpush3.msra.mxu0 %v1050_v58  ;;  %v1315_v58 = vld [vmem:[#allocation12 + $0x10] sm:$0xff] }
  0xbf   : > { %2231 = vmatprep.subr.mxu0 %v1049_v59 }
  0xc0   : > { %2232 = vmatpush3.msra.mxu0 %v1049_v59  ;;  %v1314_v59 = vld [vmem:[#allocation12 + $0x8] sm:$0xff] }
 0x15f   : > { %v2131_v45 = vpop.f32.mrf.mxu0 }
 0x160   : > { %v816_v54 = vadd.f32 %v2131_v45, %v538_v51  ;;  %v3014_v45 = vld [vmem:[%s3153_s4] ss:$0 sm:$0xff] }
 0x161   : > { %v751_v47 = vpop.f32.mrf.mxu0 }
 0x162   : > { %v814_v48 = vadd.f32 %v751_v47, %v536_v46 }
 0x163   : > { %v2132_v49 = vpop.f32.mrf.mxu0 }
 0x164   : > { %2177 = vmatprep.mubr.f32.mxu1 %v814_v48  ;;  %v817_v56 = vadd.f32 %v2132_v49, %v539_v55 }
 0x165   : > { %v754_v52 = vpop.f32.mrf.mxu0 }
 0x166   : > { %v815_v53 = vadd.f32 %v754_v52, %v537_v50 }
 0x167   : > { %v2135_v60 = vpop.f32.mrf.mxu0 }
 0x168   : > { %2178 = vmatmul.mubr.f32.vlgmr.msra.gmra.mxu1 %v815_v53  ;;  %v820_v5 = vadd.f32 %v2135_v60, %v542_v63  ;;  %v1313_v60 = vld [vmem:[#allocation12] sm:$0xff] }
 0x169   : > { %2180 = vmatprep.mubr.f32.mxu1 %v816_v54  ;;  %v767_v62 = vpop.f32.mrf.mxu0  ;;  %2258 = vmatpush3.msra.mxu1 %v1328_v3 }
 0x16a   : > { %v818_v0 = vadd.f32 %v767_v62, %v540_v61  ;;  %2259 = vmatprep.subr.mxu1 %v1327_v4 }
 0x16b   : > { %v2136_v1 = vpop.f32.mrf.mxu0  ;;  %2260 = vmatpush3.msra.mxu1 %v1327_v4 }
 0x16c   : > { %2181 = vmatmul.mubr.f32.gmra.mxu1 %v817_v56  ;;  %v821_v13 = vadd.f32 %v2136_v1, %v543_v6  ;;  %2261 = vmatprep.subr.mxu1 %v1326_v8 }
 0x16d   : > { %2183 = vmatprep.mubr.f32.mxu1 %v818_v0  ;;  %v770_v7 = vpop.f32.mrf.mxu0  ;;  %2262 = vmatpush3.msra.mxu1 %v1326_v8 }
 0x16e   : > { %v819_v9 = vadd.f32 %v770_v7, %v541_v2  ;;  %2263 = vmatprep.subr.mxu1 %v1325_v12 }
 0x16f   : > { %v2139_v10 = vpop.f32.mrf.mxu0  ;;  %2264 = vmatpush3.msra.mxu1 %v1325_v12 }
 0x170   : > { %2184 = vmatmul.mubr.f32.gmra.mxu1 %v819_v9  ;;  %2265 = vmatprep.subr.mxu1 %v1324_v15  ;;  %v824_v21 = vadd.f32 %v2139_v10, %v546_v16 }
 0x171   : > { %v783_v14 = vpop.f32.mrf.mxu0  ;;  %2186 = vmatprep.mubr.f32.mxu1 %v820_v5  ;;  %2266 = vmatpush3.msra.mxu1 %v1324_v15 }
 0x172   : > { %v822_v17 = vadd.f32 %v783_v14, %v544_v11  ;;  %2267 = vmatprep.subr.mxu1 %v1323_v20 }
 0x173   : > { %v2140_v18 = vpop.f32.mrf.mxu0  ;;  %2268 = vmatpush3.msra.mxu1 %v1323_v20 }
 0x174   : > { %2187 = vmatmul.mubr.f32.gmra.mxu1 %v821_v13  ;;  %v825_v29 = vadd.f32 %v2140_v18, %v547_v22  ;;  %2269 = vmatprep.subr.mxu1 %v1322_v24 }
 0x175   : > { %v786_v23 = vpop.f32.mrf.mxu0  ;;  %2189 = vmatprep.mubr.f32.mxu1 %v822_v17  ;;  %2270 = vmatpush3.msra.mxu1 %v1322_v24 }
 0x176   : > { %v823_v25 = vadd.f32 %v786_v23, %v545_v19  ;;  %2271 = vmatprep.subr.mxu1 %v1321_v28 }
 0x177   : > { %v2143_v26 = vpop.f32.mrf.mxu0  ;;  %2272 = vmatpush3.msra.mxu1 %v1321_v28 }
 0x178   : > { %2190 = vmatmul.mubr.f32.gmra.mxu1 %v823_v25  ;;  %2273 = vmatprep.subr.mxu1 %v1320_v31  ;;  %v828_v37 = vadd.f32 %v2143_v26, %v550_v32 }
 0x179   : > { %v799_v30 = vpop.f32.mrf.mxu0  ;;  %2192 = vmatprep.mubr.f32.mxu1 %v824_v21  ;;  %2274 = vmatpush3.msra.mxu1 %v1320_v31 }
 0x17a   : > { %v826_v33 = vadd.f32 %v799_v30, %v548_v27  ;;  %2275 = vmatprep.subr.mxu1 %v1319_v36 }
 0x17b   : > { %v2144_v34 = vpop.f32.mrf.mxu0  ;;  %2276 = vmatpush3.msra.mxu1 %v1319_v36 }
 0x17c   : > { %2193 = vmatmul.mubr.f32.gmra.mxu1 %v825_v29  ;;  %v829_v43 = vadd.f32 %v2144_v34, %v551_v38  ;;  %2277 = vmatprep.subr.mxu1 %v1318_v40 }
 0x17d   : > { %v802_v39 = vpop.f32.mrf.mxu0  ;;  %2195 = vmatprep.mubr.f32.mxu1 %v826_v33  ;;  %2278 = vmatpush3.msra.mxu1 %v1318_v40  ;;  %v3035_v33 = vld [vmem:[%s3155_s6] ss:$0 sm:$0xff] }
 0x17e   : > { %v827_v41 = vadd.f32 %v802_v39, %v549_v35  ;;  %2279 = vmatprep.subr.mxu1 %v1317_v42 }
 0x17f   : > { %2280 = vmatpush3.msra.mxu1 %v1317_v42 }
 0x180   : > { %2196 = vmatmul.mubr.f32.gmra.mxu1 %v827_v41  ;;  %2281 = vmatprep.subr.mxu1 %v1316_v44 }
 0x181   : > { %2198 = vmatprep.mubr.f32.mxu1 %v828_v37  ;;  %2282 = vmatpush3.msra.mxu1 %v1316_v44 }
 0x182   : > { %2283 = vmatprep.subr.mxu1 %v1315_v58 }
 0x183   : > { %2284 = vmatpush3.msra.mxu1 %v1315_v58 }
 0x184   : > { %2199 = vmatmul.mubr.f32.gmra.mxu1 %v829_v43  ;;  %2285 = vmatprep.subr.mxu1 %v1314_v59 }
 0x185   : > { %2286 = vmatpush3.msra.mxu1 %v1314_v59 }
 0x186   : > { %2287 = vmatprep.subr.mxu1 %v1313_v60 }
 0x187   : > { %2288 = vmatpush3.msra.mxu1 %v1313_v60 }
 0x228   : > { %v2179_v46 = vpop.f32.mrf.mxu1 }
 0x229   : > { %v960_v47 = vadd.f32 %v2179_v46, %v3014_v45 }
 0x22a   : > { %v954_v48 = vpop.f32.mrf.mxu1 }
 0x22b   : > { %v955_v49 = vadd.f32 %v3014_v45, %v954_v48  ;;  %v1034_v52 = vmax.f32 %v960_v47, 0.0 }
 0x22c   : > { %v2182_v50 = vpop.f32.mrf.mxu1 }
 0x22d   : > { %v1033_v51 = vmax.f32 %v955_v49, 0.0  ;;  %v970_v53 = vadd.f32 %v2182_v50, %v3014_v45 }
 0x22e   : > { %v964_v54 = vpop.f32.mrf.mxu1 }
 0x22f   : > { %v965_v55 = vadd.f32 %v3014_v45, %v964_v54  ;;  %2233 = vmatprep.mubr.f32.mxu0 %v1033_v51  ;;  %v1036_v57 = vmax.f32 %v970_v53, 0.0 }
 0x230   : > { %2234 = vmatmul.mubr.f32.vlgmr.msra.gmra.mxu0 %v1034_v52  ;;  %v2185_v61 = vpop.f32.mrf.mxu1 }
 0x231   : > { %v1035_v56 = vmax.f32 %v965_v55, 0.0  ;;  %v980_v62 = vadd.f32 %v2185_v61, %v3014_v45 }
 0x232   : > { %v974_v63 = vpop.f32.mrf.mxu1 }
 0x233   : > { %2236 = vmatprep.mubr.f32.mxu0 %v1035_v56  ;;  %v975_v0 = vadd.f32 %v3014_v45, %v974_v63  ;;  %v1038_v1 = vmax.f32 %v980_v62, 0.0 }
 0x234   : > { %2237 = vmatmul.mubr.f32.gmra.mxu0 %v1036_v57  ;;  %v2188_v2 = vpop.f32.mrf.mxu1 }
 0x235   : > { %v1037_v3 = vmax.f32 %v975_v0, 0.0  ;;  %v990_v4 = vadd.f32 %v2188_v2, %v3014_v45 }
 0x236   : > { %v984_v5 = vpop.f32.mrf.mxu1 }
 0x237   : > { %v985_v6 = vadd.f32 %v3014_v45, %v984_v5  ;;  %2239 = vmatprep.mubr.f32.mxu0 %v1037_v3  ;;  %v1040_v7 = vmax.f32 %v990_v4, 0.0 }
 0x238   : > { %v2191_v8 = vpop.f32.mrf.mxu1  ;;  %2240 = vmatmul.mubr.f32.gmra.mxu0 %v1038_v1 }
 0x239   : > { %v1039_v9 = vmax.f32 %v985_v6, 0.0  ;;  %v1000_v10 = vadd.f32 %v2191_v8, %v3014_v45 }
 0x23a   : > { %v994_v11 = vpop.f32.mrf.mxu1 }
 0x23b   : > { %v995_v12 = vadd.f32 %v3014_v45, %v994_v11  ;;  %2242 = vmatprep.mubr.f32.mxu0 %v1039_v9  ;;  %v1042_v13 = vmax.f32 %v1000_v10, 0.0 }
 0x23c   : > { %v2194_v14 = vpop.f32.mrf.mxu1  ;;  %2243 = vmatmul.mubr.f32.gmra.mxu0 %v1040_v7 }
 0x23d   : > { %v1041_v15 = vmax.f32 %v995_v12, 0.0  ;;  %v1010_v16 = vadd.f32 %v2194_v14, %v3014_v45 }
 0x23e   : > { %v1004_v17 = vpop.f32.mrf.mxu1 }
 0x23f   : > { %v1005_v18 = vadd.f32 %v3014_v45, %v1004_v17  ;;  %2245 = vmatprep.mubr.f32.mxu0 %v1041_v15  ;;  %v1044_v19 = vmax.f32 %v1010_v16, 0.0 }
 0x240   : > { %v2197_v20 = vpop.f32.mrf.mxu1  ;;  %2246 = vmatmul.mubr.f32.gmra.mxu0 %v1042_v13 }
 0x241   : > { %v1043_v21 = vmax.f32 %v1005_v18, 0.0  ;;  %v1020_v22 = vadd.f32 %v2197_v20, %v3014_v45 }
 0x242   : > { %v1014_v23 = vpop.f32.mrf.mxu1 }
 0x243   : > { %v1015_v24 = vadd.f32 %v3014_v45, %v1014_v23  ;;  %2248 = vmatprep.mubr.f32.mxu0 %v1043_v21  ;;  %v1046_v25 = vmax.f32 %v1020_v22, 0.0 }
 0x244   : > { %v2200_v26 = vpop.f32.mrf.mxu1  ;;  %2249 = vmatmul.mubr.f32.gmra.mxu0 %v1044_v19 }
 0x245   : > { %v1045_v27 = vmax.f32 %v1015_v24, 0.0  ;;  %v1030_v28 = vadd.f32 %v2200_v26, %v3014_v45 }
 0x246   : > { %v1024_v29 = vpop.f32.mrf.mxu1 }
 0x247   : > { %v1025_v30 = vadd.f32 %v3014_v45, %v1024_v29  ;;  %2251 = vmatprep.mubr.f32.mxu0 %v1045_v27  ;;  %v1048_v31 = vmax.f32 %v1030_v28, 0.0  ;;  %v1927_v27 = vld [vmem:[%s3157_s8] ss:$0 sm:$0xff] }
 0x248   : > { %2252 = vmatmul.mubr.f32.gmra.mxu0 %v1046_v25 }
 0x249   : > { %v1047_v32 = vmax.f32 %v1025_v30, 0.0 }
 0x24b   : > { %2254 = vmatprep.mubr.f32.mxu0 %v1047_v32 }
 0x24c   : > { %2255 = vmatmul.mubr.f32.gmra.mxu0 %v1048_v31 }
 0x2f0   : > { %v2235_v34 = vpop.f32.mrf.mxu0 }
 0x2f1   : > { %v1144_v35 = vadd.f32 %v2235_v34, %v3035_v33  ;;  %v1928_v34 = vld [vmem:[%s3158_s9] ss:$0 sm:$0xff] }
 0x2f2   : > { %v1138_v36 = vpop.f32.mrf.mxu0 }
 0x2f3   : > { %v1139_v37 = vadd.f32 %v3035_v33, %v1138_v36  ;;  %v1218_v39 = vmax.f32 %v1144_v35, 0.0 }
 0x2f4   : > { %v2238_v38 = vpop.f32.mrf.mxu0 }
 0x2f5   : > { %v1217_v40 = vmax.f32 %v1139_v37, 0.0  ;;  %v1154_v41 = vadd.f32 %v2238_v38, %v3035_v33 }
 0x2f6   : > { %v1148_v42 = vpop.f32.mrf.mxu0 }
 0x2f7   : > { %v1957_v43 = vpack.c.bf16 %v1218_v39, %v1217_v40  ;;  %v1149_v44 = vadd.f32 %v3035_v33, %v1148_v42  ;;  %2289 = vmatprep.mubr.f32.mxu1 %v1217_v40  ;;  %v1220_v45 = vmax.f32 %v1154_v41, 0.0 }
 0x2f8   : > { %2290 = vmatmul.mubr.f32.vlgmr.msra.gmra.mxu1 %v1218_v39  ;;  %v2241_v48 = vpop.f32.mrf.mxu0 }
 0x2f9   : > { %1958 = vst [vmem:[%s3043_s15] sm:$0xff] %v1957_v43   ;;  %v1219_v46 = vmax.f32 %v1149_v44, 0.0  ;;  %v1164_v49 = vadd.f32 %v2241_v48, %v3035_v33 }
 0x2fa   : > { %v1158_v50 = vpop.f32.mrf.mxu0 }
 0x2fb   : > { %v1962_v47 = vpack.c.bf16 %v1220_v45, %v1219_v46  ;;  %2292 = vmatprep.mubr.f32.mxu1 %v1219_v46  ;;  %v1159_v51 = vadd.f32 %v3035_v33, %v1158_v50  ;;  %v1222_v52 = vmax.f32 %v1164_v49, 0.0 }
 0x2fc   : > { %2293 = vmatmul.mubr.f32.gmra.mxu1 %v1220_v45  ;;  %v2244_v53 = vpop.f32.mrf.mxu0 }
 0x2fd   : > { %1994 = vst [vmem:[%s3043_s15 + $0x8] sm:$0xff] %v1962_v47   ;;  %v1221_v54 = vmax.f32 %v1159_v51, 0.0  ;;  %v1174_v55 = vadd.f32 %v2244_v53, %v3035_v33 }
 0x2fe   : > { %v1168_v56 = vpop.f32.mrf.mxu0 }
 0x2ff   : > { %v1967_v57 = vpack.c.bf16 %v1222_v52, %v1221_v54  ;;  %v1169_v58 = vadd.f32 %v3035_v33, %v1168_v56  ;;  %2295 = vmatprep.mubr.f32.mxu1 %v1221_v54  ;;  %v1224_v59 = vmax.f32 %v1174_v55, 0.0 }
 0x300   : > { %v2247_v60 = vpop.f32.mrf.mxu0  ;;  %2296 = vmatmul.mubr.f32.gmra.mxu1 %v1222_v52 }
 0x301   : > { %1995 = vst [vmem:[%s3043_s15 + $0x10] sm:$0xff] %v1967_v57   ;;  %v1223_v61 = vmax.f32 %v1169_v58, 0.0  ;;  %v1184_v62 = vadd.f32 %v2247_v60, %v3035_v33 }
 0x302   : > { %v1178_v63 = vpop.f32.mrf.mxu0 }
 0x303   : > { %v1972_v0 = vpack.c.bf16 %v1224_v59, %v1223_v61  ;;  %v1179_v1 = vadd.f32 %v3035_v33, %v1178_v63  ;;  %2298 = vmatprep.mubr.f32.mxu1 %v1223_v61  ;;  %v1226_v2 = vmax.f32 %v1184_v62, 0.0 }
 0x304   : > { %v2250_v3 = vpop.f32.mrf.mxu0  ;;  %2299 = vmatmul.mubr.f32.gmra.mxu1 %v1224_v59 }
 0x305   : > { %1996 = vst [vmem:[%s3043_s15 + $0x18] sm:$0xff] %v1972_v0   ;;  %v1225_v4 = vmax.f32 %v1179_v1, 0.0  ;;  %v1194_v5 = vadd.f32 %v2250_v3, %v3035_v33 }
 0x306   : > { %v1188_v6 = vpop.f32.mrf.mxu0 }
 0x307   : > { %v1977_v7 = vpack.c.bf16 %v1226_v2, %v1225_v4  ;;  %v1189_v8 = vadd.f32 %v3035_v33, %v1188_v6  ;;  %2301 = vmatprep.mubr.f32.mxu1 %v1225_v4  ;;  %v1228_v9 = vmax.f32 %v1194_v5, 0.0 }
 0x308   : > { %v2253_v10 = vpop.f32.mrf.mxu0  ;;  %2302 = vmatmul.mubr.f32.gmra.mxu1 %v1226_v2 }
 0x309   : > { %1997 = vst [vmem:[%s3043_s15 + $0x20] sm:$0xff] %v1977_v7   ;;  %v1227_v11 = vmax.f32 %v1189_v8, 0.0  ;;  %v1204_v12 = vadd.f32 %v2253_v10, %v3035_v33 }
 0x30a   : > { %v1198_v13 = vpop.f32.mrf.mxu0 }
 0x30b   : > { %v1982_v14 = vpack.c.bf16 %v1228_v9, %v1227_v11  ;;  %v1199_v15 = vadd.f32 %v3035_v33, %v1198_v13  ;;  %2304 = vmatprep.mubr.f32.mxu1 %v1227_v11  ;;  %v1230_v16 = vmax.f32 %v1204_v12, 0.0 }
 0x30c   : > { %v2256_v17 = vpop.f32.mrf.mxu0  ;;  %2305 = vmatmul.mubr.f32.gmra.mxu1 %v1228_v9 }
 0x30d   : > { %1998 = vst [vmem:[%s3043_s15 + $0x28] sm:$0xff] %v1982_v14   ;;  %v1229_v18 = vmax.f32 %v1199_v15, 0.0  ;;  %v1214_v19 = vadd.f32 %v2256_v17, %v3035_v33 }
 0x30e   : > { %v1208_v20 = vpop.f32.mrf.mxu0 }
 0x30f   : > { %v1987_v21 = vpack.c.bf16 %v1230_v16, %v1229_v18  ;;  %v1209_v22 = vadd.f32 %v3035_v33, %v1208_v20  ;;  %2307 = vmatprep.mubr.f32.mxu1 %v1229_v18  ;;  %v1232_v23 = vmax.f32 %v1214_v19, 0.0 }
 0x310   : > { %2308 = vmatmul.mubr.f32.gmra.mxu1 %v1230_v16 }
 0x311   : > { %1999 = vst [vmem:[%s3043_s15 + $0x30] sm:$0xff] %v1987_v21   ;;  %v1231_v24 = vmax.f32 %v1209_v22, 0.0 }
 0x313   : > { %v1992_v25 = vpack.c.bf16 %v1232_v23, %v1231_v24  ;;  %2310 = vmatprep.mubr.f32.mxu1 %v1231_v24 }
 0x314   : > { %2311 = vmatmul.mubr.f32.gmra.mxu1 %v1232_v23 }
 0x315   : > { %2000 = vst [vmem:[%s3043_s15 + $0x38] sm:$0xff] %v1992_v25  }
 0x3b8   : > { %v2291_v26 = vpop.f32.mrf.mxu1 }
 0x3b9   : > { %v1408_v29 = vadd.f32 %v2291_v26, %v1927_v27 }
 0x3ba   : > { %v1402_v28 = vpop.f32.mrf.mxu1 }
 0x3bb   : > { %v1403_v30 = vadd.f32 %v1927_v27, %v1402_v28 }
 0x3bc   : > { %v2294_v31 = vpop.f32.mrf.mxu1 }
 0x3bd   : > { %2455 = vtanh.f32 %v1403_v30 }
 0x3be   : > { %v1412_v32 = vpop.f32.mrf.mxu1  ;;  %2457 = vtanh.f32 %v1408_v29 }
 0x3c0   : > { %v2297_v38 = vpop.f32.mrf.mxu1 }
 0x3c2   : > { %v1422_v39 = vpop.f32.mrf.mxu1 }
 0x3c4   : > { %v2300_v40 = vpop.f32.mrf.mxu1 }
 0x3c6   : > { %v1432_v41 = vpop.f32.mrf.mxu1 }
 0x3c8   : > { %v2303_v42 = vpop.f32.mrf.mxu1 }
 0x3ca   : > { %v2456_v33 = vpop.eup %2455  ;;  %v1442_v43 = vpop.f32.mrf.mxu1 }
 0x3cb   : > { %v1504_v35 = vmul.f32 %v2456_v33, %v1928_v34  ;;  %v2458_v36 = vpop.eup %2457 }
 0x3cc   : > { %v1505_v37 = vmul.f32 %v2458_v36, %v1928_v34  ;;  %v2306_v44 = vpop.f32.mrf.mxu1 }
 0x3cd   : > { %1520 = vadd.xlane.f32.xlu0 %v1504_v35 }
 0x3ce   : > { %v1452_v45 = vpop.f32.mrf.mxu1 }
 0x3d0   : > { %v2309_v46 = vpop.f32.mrf.mxu1 }
 0x3d1   : > { %1522 = vadd.xlane.f32.xlu0 %v1505_v37 }
 0x3d2   : > { %v1462_v47 = vpop.f32.mrf.mxu1 }
 0x3d4   : > { %v2312_v48 = vpop.f32.mrf.mxu1 }
 0x3d6   : > { %v1472_v49 = vpop.f32.mrf.mxu1 }
 0x456   : > { %v1521_v50 = vpop.xlane.xlu0 %1520 }
 0x457   : > { %v1619_v52 = vsel %vm1618_vm0, %v1521_v50, 0.0 }
 0x45a   : > { %v1523_v51 = vpop.xlane.xlu0 %1522 }
 0x45b   : > { %v1620_v53 = vsel %vm1618_vm0, %v1523_v51, 0.0 }
 0x45c   : > { %v1621_v54 = vadd.f32 %v1620_v53, %v1619_v52 }
 0x45e   : > { %1650 = vadd.xlane.f32.xlu1 %v1621_v54 }
 0x45f   : > { %2630 = shalt.err (!%p2627_p6)
}
 0x460   : > { %s2631_s15 = scalar_lea.hbm %s3078_s7, 1024  ;;  %s2635_s14 = scalar_lea.hbm %s3193_s5, 3072 }
 0x461   : > { %p2632_p12 = scmp.ne.s32.totalorder %s3078_s7, %s2631_s15  ;;  %p2636_p4 = scmp.lt.s32.totalorder %s3078_s7, %s3193_s5 }
 0x462   : > { %p2637_p7 = scmp.lt.s32.totalorder %s2635_s14, %s2631_s15 }
 0x463   : > { %p2633_p13 = pnand %p2632_p12, %p3194_p3 }
 0x464   : > { %p2638_p8 = por %p2637_p7, %p2636_p4 }
 0x465   : > { %p2634_p0 = pneg %p2633_p13 }
 0x467   : > { %p2639_p1 = pnand %p2638_p8, %p2634_p0 }
 0x469   : > { %2642 = shalt.err (!%p2639_p1)
}
 0x46a   : > { %s2752_s2 = smov 64   ;;  %s2753_s27 = smov 4  }
 0x46b   : > { %2337 = dma.vmem_to_hbm [thread:$0]  (%p3194_p3), %s3073_s30, 1024, %s3078_s7, %s1662_s12, %s2752_s2, %s2752_s2, %s2753_s27  }
 0x46c   : > { %s1892_s3 = sshll.u32 %s2979_s11, 3  ;;  %s1933_s10 = sshll.u32 %s2731_s20, 7 }
 0x46d   : > { %s526_s24 = scalar_lea.vmem [#allocation15], %s1892_s3  ;;  %s3195_s15 = sld [smem:[#allocation30_spill]] }
 0x46e   : > { %s1699_s25 = sshll.u32 %s526_s24, 4  ;;  %s1667_s13 = scalar_lea.sflag [#allocation16], %s2979_s11  ;;  %s3105_s25 = int_to_ptr.vmem [resolvable:$true] %s1699_s25 }
 0x46f   : > { %s2643_s14 = scalar_lea.vmem %s3105_s25, 128  ;;  %s2754_s28 = smov [#allocation15]  }
 0x470   : > { %p2644_p2 = scmp.ne.s32.totalorder %s3105_s25, %s2643_s14  ;;  %s2647_s20 = sshll.u32 %s2754_s28, 4  ;;  %s2648_s20 = int_to_ptr.vmem [resolvable:$false] %s2647_s20 }
 0x471   : > { %s2649_s1 = scalar_lea.vmem %s2648_s20, 256  ;;  %p2650_p10 = scmp.lt.s32.totalorder %s3105_s25, %s2648_s20 }
 0x472   : > { %p2645_p5 = pnand %p2644_p2, %p3194_p3  ;;  %p2651_p11 = scmp.lt.s32.totalorder %s2649_s1, %s2643_s14 }
 0x473   : > { %s1697_s29 = scalar_lea.hbm %s3195_s15, %s1933_s10 }
 0x474   : > { %p2646_p9 = pneg %p2645_p5  ;;  %p2652_p6 = por %p2651_p11, %p2650_p10 }
 0x476   : > { %p2653_p12 = pnand %p2652_p6, %p2646_p9 }
 0x4e7   : > { %v1651_v55 = vpop.xlane.xlu1 %1650 }
 0x4e8   : > { %v1652_v56 = vrot.slane %v1651_v55, 4 }
 0x4ea   : > { %v1653_v57 = vadd.f32 %v1652_v56, %v1651_v55 }
 0x4ec   : > { %v1654_v58 = vrot.slane %v1653_v57, 2 }
 0x4ee   : > { %v1655_v59 = vadd.f32 %v1654_v58, %v1653_v57 }
 0x4f0   : > { %v1656_v60 = vrot.slane %v1655_v59, 1 }
 0x4f2   : > { %v1657_v61 = vadd.f32 %v1656_v60, %v1655_v59 }
 0x4f4   : > { %2313 = vpush %v1657_v61 }
 0x525   : > { %s2314_s30 = spop %2313 }
 0x526   : > { %v1659_v62 = vstv %s2314_s30 }
 0x527   : > { %1660 = vst [vmem:[%s526_s24] sm:$0xff] %v1659_v62 }
 0x528   : > { %2656 = shalt.err (!%p2653_p12)
}
 0x529   : > { %s2657_s2 = scalar_lea.hbm %s1697_s29, 128  ;;  %s2661_s3 = scalar_lea.hbm %s3195_s15, 384 }
 0x52a   : > { %p2658_p13 = scmp.ne.s32.totalorder %s1697_s29, %s2657_s2  ;;  %p2662_p7 = scmp.lt.s32.totalorder %s1697_s29, %s3195_s15 }
 0x52b   : > { %p2663_p8 = scmp.lt.s32.totalorder %s2661_s3, %s2657_s2 }
 0x52c   : > { %p2659_p0 = pnand %p2658_p13, %p3194_p3 }
 0x52d   : > { %p2664_p1 = por %p2663_p8, %p2662_p7 }
 0x52e   : > { %p2660_p4 = pneg %p2659_p0 }
 0x530   : > { %p2665_p2 = pnand %p2664_p1, %p2660_p4 }
 0x532   : > { %2668 = shalt.err (!%p2665_p2)
}
 0x533   : > { %2338 = dma.vmem_to_hbm [thread:$0]  (%p3194_p3), %s3105_s25, 128, %s1697_s29, %s1667_s13  }
 0x534 PF: > { %p2379_p5 = scmp.ge.s32.totalorder %s2739_s22, 2  ;;  %s1711_s30 = sand.u32 1, %s2719_s17  }
 0x535   : > { %p3196_p9 = scmp.ne.s32.totalorder %s3189_s26, 0  ;;  %s1712_s7 = scalar_lea.sflag [#allocation5], %s1711_s30 }
 0x537   : > { %p2362_p10 = pnand %p2379_p5, %p3196_p9 }
 0x539   : > { %p2363_p11 = pneg %p2362_p10 }
 0x53b   : > { %2710 = dma.done.wait (%p2363_p11), %s1712_s7, 1024  }
 0x53c   : > { %2712 = vsyncadd (%p2363_p11), %s1712_s7, 4294966272  ;;  %s1721_s12 = scalar_lea.sflag [#allocation16], %s1711_s30 }
 0x53d   : > { %2714 = dma.done.wait (%p2363_p11), %s1721_s12, 128  }
 0x53e   : > { %2716 = vsyncadd (%p2363_p11), %s1721_s12, 4294967168  ;;  %s34_s22 = sadd.s32 1, %s2739_s22   ;;  %s3197_s16 = sld [smem:[#allocation23_spill]] }
 0x53f   : > { %p31_p6 = scmp.ge.s32.totalorder %s34_s22, 5   ;;  %s3198_s17 = smov %s2723_s18 }
 0x540   : > { %s3199_s18 = smov %s2727_s19  ;;  %s3200_s19 = smov %s2952_s23 }
 0x541   : > { %s3201_s20 = smov %s2735_s21  ;;  %33 = sbr.rel (!%p31_p6) target bundleno = 19 (0x13), region = 152 }
 0x544   : > { %s3202_s21 = smov %s3197_s16 }
 0x546   :  { %1726 = vsyncpa [#allocation4], 1 }
 0x547   :  { %1728 = vsyncpa [#allocation4 + $0x1], 1 }
 0x548   :  { %1729 = vsyncpa [#allocation7], 1 }
 0x549   :  { %1730 = vsyncpa [#allocation10], 1 }
 0x54a   :  { %1731 = vsyncpa [#allocation13], 1 }
 0x54b   :  { %1732 = vsyncpa [#allocation5], 1 }
 0x54c   :  { %1734 = vsyncpa [#allocation5 + $0x1], 1 }
 0x54d   :  { %1735 = vsyncpa [#allocation16], 1 }
 0x54e   :  { %1737 = vsyncpa [#allocation16 + $0x1], 1 }

</bundles_post_ra>
